<compile_context>
chip_gen: v7x
topology: tpu7x:2x2x1
jax: 0.10.0
libtpu: 0.0.40
codegen_flags: <defaults>
</compile_context>

<pallas_src>
import math

import jax
import jax.numpy as jnp
import numpy as np
from jax.experimental import pallas as pl
from jax.experimental.pallas import tpu as pltpu


# ----------------------------------------------------------------------------
# Pallas kernel: conv3x3 (pad=1) + bias + ReLU + fused PixelShuffle column order
# ----------------------------------------------------------------------------
def _make_conv3x3_relu_ps_kernel(H, W, Cin, Nout, compute_dtype):
    """Kernel factory (static H, W, Cin, Nout captured by closure).

    x_ref:    (TB, H, W*Cin)          input block, channels-last merged into lanes
    w_ref:    (3, (W+2)*Cin, Nout)    banded + pixel-shuffle-permuted weight (per dy)
    b_ref:    (1, Nout)               permuted bias, f32
    o_ref:    (TB, H, Nout)           Nout = r*W*r*C  (lane-dense, multiple of 128 here)
    xpad_ref: (TB, H+2, (W+2)*Cin)    VMEM scratch with zero halo
    """
    WCp = (W + 2) * Cin

    def kernel(x_ref, w_ref, b_ref, o_ref, xpad_ref):
        TB = x_ref.shape[0]

        # --- zero ONLY the halo (interior is overwritten right below). Re-done
        # every step on purpose: with a "parallel" grid a program_id==0-only
        # init would be wrong. ---
        zero_row = jnp.zeros((TB, 1, WCp), compute_dtype)
        xpad_ref[:, 0:1, :] = zero_row
        xpad_ref[:, H + 1:H + 2, :] = zero_row
        zero_col = jnp.zeros((TB, H, Cin), compute_dtype)
        xpad_ref[:, 1:H + 1, 0:Cin] = zero_col
        xpad_ref[:, 1:H + 1, (W + 1) * Cin:WCp] = zero_col
        xpad_ref[:, 1:H + 1, Cin:(W + 1) * Cin] = x_ref[...]

        # --- 3 row-shifted (cheap sublane-slice) matmuls. The conv over W and the
        # PixelShuffle output permutation live in the weight columns, so the
        # result is already in (i, w, j, c) lane order -> store is lane-dense. ---
        acc = jnp.zeros((TB * H, Nout), jnp.float32)
        for dy in range(3):
            p = xpad_ref[:, dy:dy + H, :].reshape(TB * H, WCp)
            acc = acc + jnp.dot(p, w_ref[dy], preferred_element_type=jnp.float32)

        acc = jnp.maximum(acc + b_ref[...], 0.0)          # f32 bias + ReLU epilogue
        o_ref[...] = acc.reshape(TB, H, Nout).astype(o_ref.dtype)

    return kernel


# ----------------------------------------------------------------------------
# VMEM budgeting + batch blocking
# ----------------------------------------------------------------------------
def _round_up(x, m):
    return ((x + m - 1) // m) * m


def _vmem_bytes_estimate(tb, H, W, Cin, Nout, compute_dtype):
    """Rough per-step VMEM high-water estimate (lane-padded to 128)."""
    bpe = np.dtype(compute_dtype).itemsize
    lane = 128
    in_blk = tb * H * _round_up(W * Cin, lane) * bpe
    out_blk = tb * H * _round_up(Nout, lane) * bpe
    xpad = tb * (H + 2) * _round_up((W + 2) * Cin, lane) * bpe
    wgt = 3 * (W + 2) * Cin * _round_up(Nout, lane) * bpe
    bias = _round_up(Nout, lane) * 4
    acc = tb * H * _round_up(Nout, lane) * 4
    tap = tb * H * _round_up((W + 2) * Cin, lane) * bpe    # one shifted view live at a time
    # inputs/outputs double-buffered by the pipeline; weight/bias resident (count x2).
    return 2 * (in_blk + out_blk) + xpad + 2 * wgt + 2 * bias + acc + 2 * tap


def _pick_batch_block(n, H, W, Cin, Nout, compute_dtype, budget_bytes=24 << 20):
    """Largest tb dividing n that fits the VMEM budget (grid of 1 is fine on
    single-TensorCore v5e/v6e).
    TODO(synk): on v7x (2 TensorCores) prefer >=2 grid steps when each step
    carries at least a few microseconds of work."""
    best = 1
    for tb in range(1, n + 1):
        if n % tb == 0 and _vmem_bytes_estimate(tb, H, W, Cin, Nout, compute_dtype) <= budget_bytes:
            best = tb
    return best


# ----------------------------------------------------------------------------
# Wrapper around pallas_call (one conv+relu+pixelshuffle stage)
# ----------------------------------------------------------------------------
def conv3x3_relu_ps_flat(x_flat, w_full, bias_all, *, H, W, Cin, r,
                         compute_dtype=jnp.bfloat16, batch_block=None):
    """x_flat: (N, H, W*Cin) -> (N, H, r*W*r*Cin) where the output lanes are
    ordered (i, w, j, c); reshaping to (N, H*r, W*r, Cin) outside is free."""
    N = x_flat.shape[0]
    Nout = w_full.shape[-1]
    WCp = (W + 2) * Cin
    assert x_flat.shape == (N, H, W * Cin)
    assert w_full.shape == (3, WCp, Nout)

    tb = batch_block if batch_block is not None else _pick_batch_block(
        N, H, W, Cin, Nout, compute_dtype)
    assert N % tb == 0

    est = _vmem_bytes_estimate(tb, H, W, Cin, Nout, compute_dtype)
    vmem_limit = int(min(48 << 20, max(32 << 20, 2 * est)))   # explicit, v7x-safe

    kernel = _make_conv3x3_relu_ps_kernel(H, W, Cin, Nout, compute_dtype)

    # TODO(synk): add a spatial (row) grid axis with a 1-row halo for frames whose
    # full-image block exceeds the VMEM budget even at tb=1 (v7x has only 64 MiB).
    return pl.pallas_call(
        kernel,
        out_shape=jax.ShapeDtypeStruct((N, H, Nout), compute_dtype),
        grid_spec=pltpu.PrefetchScalarGridSpec(
            num_scalar_prefetch=0,
            grid=(N // tb,),
            in_specs=[
                pl.BlockSpec((tb, H, W * Cin), lambda n: (n, 0, 0)),
                pl.BlockSpec((3, WCp, Nout), lambda n: (0, 0, 0)),   # resident weight
                pl.BlockSpec((1, Nout), lambda n: (0, 0)),           # resident bias
            ],
            out_specs=pl.BlockSpec((tb, H, Nout), lambda n: (n, 0, 0)),
            scratch_shapes=[pltpu.VMEM((tb, H + 2, WCp), compute_dtype)],
        ),
        compiler_params=pltpu.CompilerParams(
            dimension_semantics=("parallel",),
            vmem_limit_bytes=vmem_limit),
    )(x_flat.astype(compute_dtype),
      w_full.astype(compute_dtype),
      bias_all.astype(jnp.float32))


# ----------------------------------------------------------------------------
# Parameter preprocessing (wrapper side, tiny tensors)
# ----------------------------------------------------------------------------
def weight_norm(v, g):
    """PyTorch weight_norm (dim=0): w = g * v / ||v||, norm over (Cin, kH, kW)."""
    norm = jnp.sqrt(jnp.sum(v * v, axis=(1, 2, 3), keepdims=True))
    return g.reshape(-1, 1, 1, 1) * v / norm


def build_stage_weights(w_oihw, bias, W, r):
    """Build the banded, PixelShuffle-permuted weight and bias.

    w_oihw: (Cout, Cin, 3, 3) with Cout = r*r*C (PyTorch OIHW).
    Returns:
      w_full:   (3, (W+2)*Cin, r*W*r*C) rows ordered (p, ci), cols ordered (i, w, j, c)
      bias_all: (1, r*W*r*C) f32, same column order.
    """
    Cout, Cin, _, _ = w_oihw.shape
    C = Cout // (r * r)
    # co = c*r*r + i*r + j  ->  [c, i, j, ci, dy, dx]
    wgt_r = w_oihw.reshape(C, r, r, Cin, 3, 3)
    # E[dx, p, w] = 1 iff p == w + dx  (padded column p feeds output column w for tap dx)
    E = jnp.stack([jnp.eye(W + 2, W, k=-dx, dtype=w_oihw.dtype) for dx in range(3)])
    w_full = jnp.einsum('xpw,cijkyx->ypkiwjc', E, wgt_r)      # (3, W+2, Cin, r, W, r, C)
    w_full = w_full.reshape(3, (W + 2) * Cin, r * W * r * C)

    b3 = bias.reshape(C, r, r)                                # [c, i, j]
    bt = jnp.transpose(b3, (1, 2, 0))                         # [i, j, c]
    bias_all = jnp.broadcast_to(bt[:, None, :, :], (r, W, r, C)).reshape(1, r * W * r * C)
    return w_full, bias_all


def make_upsample_params(key, n_channels, upscale, dtype=jnp.float32):
    """Deterministic parameter init matching the module's shapes.
    Returns a list of (v, g, b) per conv stage, PyTorch OIHW layout for v."""
    if upscale in (2, 4, 8):
        stages = int(math.log(upscale, 2))
        factor = 2
    elif upscale in (3, 5):
        stages = 1
        factor = upscale
    else:
        raise ValueError("unsupported upscale")
    params = []
    cin = n_channels
    for _ in range(stages):
        cout = factor * factor * n_channels
        k_v, k_g, k_b, key = jax.random.split(key, 4)
        fan_in = cin * 3 * 3
        bound = 1.0 / math.sqrt(fan_in)
        v = jax.random.uniform(k_v, (cout, cin, 3, 3), dtype, -bound, bound)
        # weight_norm init: g = ||v|| per output channel (effective w == v at init)
        g = jnp.sqrt(jnp.sum(v * v, axis=(1, 2, 3)))
        b = jax.random.uniform(k_b, (cout,), dtype, -bound, bound)
        params.append((v, g, b))
    return params, factor


# ----------------------------------------------------------------------------
# Full forward pass (NCHW in / NCHW out, like the PyTorch module)
# ----------------------------------------------------------------------------
def upsample_block(x_nchw, params, factor, *, compute_dtype=jnp.bfloat16):
    """UpsampleBlock forward: (N, C, H, W) -> (N, C, H*upscale, W*upscale)."""
    N, C, H, W = x_nchw.shape
    r = factor
    # NCHW -> lane-dense (N, H, W*C); under jit the transpose and the bf16 cast
    # of the first pallas_call operand fuse into a single HBM pass.
    x = jnp.transpose(x_nchw, (0, 2, 3, 1)).reshape(N, H, W * C)
    for (v, g, b) in params:
        w = weight_norm(v, g)                                 # (r*r*C, C, 3, 3) OIHW, f32
        w_full, bias_all = build_stage_weights(w, b, W, r)
        y = conv3x3_relu_ps_flat(x, w_full, bias_all, H=H, W=W, Cin=C, r=r,
                                 compute_dtype=compute_dtype)  # (N, H, r*W*r*C) bf16
        H, W = H * r, W * r
        x = y.reshape(N, H, W * C)   # trailing-dim split + leading merge: free (PixelShuffle done)
    out = x.reshape(N, H, W, C)
    return jnp.transpose(out, (0, 3, 1, 2)).astype(x_nchw.dtype)   # single f32 cast at the end


# ----------------------------------------------------------------------------
# Pure-JAX f32 reference (conv + bias + ReLU + PixelShuffle)
# ----------------------------------------------------------------------------
def reference_upsample(x_nchw, params, factor):
    x = x_nchw
    for (v, g, b) in params:
        w = weight_norm(v, g)
        y = jax.lax.conv_general_dilated(
            x, w, window_strides=(1, 1), padding=((1, 1), (1, 1)),
            dimension_numbers=("NCHW", "OIHW", "NCHW"),
            precision=jax.lax.Precision.HIGHEST)
        y = jnp.maximum(y + b.reshape(1, -1, 1, 1), 0.0)
        n, crr, h, wd = y.shape
        c = crr // (factor * factor)
        y = y.reshape(n, c, factor, factor, h, wd)
        y = jnp.transpose(y, (0, 1, 4, 2, 5, 3))
        x = y.reshape(n, c, h * factor, wd * factor)
    return x


if __name__ == "__main__":
    key = jax.random.PRNGKey(0)
    n_channels, upscale = 4, 2
    N, H, W = 2, 16, 16

    k_x, k_p = jax.random.split(key)
    x = jax.random.normal(k_x, (N, n_channels, H, W), jnp.float32)
    params, factor = make_upsample_params(k_p, n_channels, upscale)

    fwd = jax.jit(lambda xx: upsample_block(xx, params, factor))
    out = jax.block_until_ready(fwd(x))

    assert out.shape == (N, n_channels, H * upscale, W * upscale), out.shape

    ref = reference_upsample(x, params, factor)
    err = float(jnp.max(jnp.abs(out - ref)))
    assert err < 1e-1, f"max abs err vs f32 reference: {err}"

    print("KERNEL_OK")
</pallas_src>

<mosaic_0001>
module attributes {stable_mosaic.version = 11 : i64} {
  func.func @kernel(%arg0: i32, %arg1: memref<2x16x64xbf16, #tpu.memory_space<vmem>>, %arg2: memref<3x72x256xbf16, #tpu.memory_space<vmem>>, %arg3: memref<1x256xf32, #tpu.memory_space<vmem>>, %arg4: memref<2x16x256xbf16, #tpu.memory_space<vmem>>, %arg5: memref<2x18x72xbf16, #tpu.memory_space<vmem>>) attributes {dimension_semantics = [#tpu.dimension_semantics<parallel>], iteration_bounds = array<i64: 1>, scalar_prefetch = 0 : i64, scratch_operands = 1 : i64, tpu.core_type = #tpu.core_type<tc>, window_params = [{transform_indices = @transform_0, window_bounds = array<i64: 2, 16, 64>}, {pipeline_mode = #tpu.pipeline_mode<synchronous>, transform_indices = @transform_1, window_bounds = array<i64: 3, 72, 256>}, {pipeline_mode = #tpu.pipeline_mode<synchronous>, transform_indices = @transform_2, window_bounds = array<i64: 1, 256>}, {transform_indices = @transform_3, window_bounds = array<i64: 2, 16, 256>}]} {
    %cst = arith.constant 0.000000e+00 : bf16
    %0 = vector.broadcast %cst : bf16 to vector<2x1x72xbf16>
    %c0 = arith.constant 0 : index
    %c0_0 = arith.constant 0 : index
    %c0_1 = arith.constant 0 : index
    %1 = vector.load %arg5[%c0, %c0_0, %c0_1] : memref<2x18x72xbf16, #tpu.memory_space<vmem>>, vector<2x1x72xbf16>
    tpu.vector_store %arg5[%c0, %c0_0, %c0_1], %0 {strides = array<i32>} : memref<2x18x72xbf16, #tpu.memory_space<vmem>>, vector<2x1x72xbf16>,
    %c0_2 = arith.constant 0 : index
    %c17 = arith.constant 17 : index
    %c0_3 = arith.constant 0 : index
    %2 = vector.load %arg5[%c0_2, %c17, %c0_3] : memref<2x18x72xbf16, #tpu.memory_space<vmem>>, vector<2x1x72xbf16>
    tpu.vector_store %arg5[%c0_2, %c17, %c0_3], %0 {strides = array<i32>} : memref<2x18x72xbf16, #tpu.memory_space<vmem>>, vector<2x1x72xbf16>,
    %cst_4 = arith.constant 0.000000e+00 : bf16
    %3 = vector.broadcast %cst_4 : bf16 to vector<2x16x4xbf16>
    %c0_5 = arith.constant 0 : index
    %c1 = arith.constant 1 : index
    %c0_6 = arith.constant 0 : index
    %4 = vector.load %arg5[%c0_5, %c1, %c0_6] : memref<2x18x72xbf16, #tpu.memory_space<vmem>>, vector<2x16x4xbf16>
    tpu.vector_store %arg5[%c0_5, %c1, %c0_6], %3 {strides = array<i32>} : memref<2x18x72xbf16, #tpu.memory_space<vmem>>, vector<2x16x4xbf16>,
    %c0_7 = arith.constant 0 : index
    %c1_8 = arith.constant 1 : index
    %c68 = arith.constant 68 : index
    %5 = vector.load %arg5[%c0_7, %c1_8, %c68] : memref<2x18x72xbf16, #tpu.memory_space<vmem>>, vector<2x16x4xbf16>
    tpu.vector_store %arg5[%c0_7, %c1_8, %c68], %3 {strides = array<i32>} : memref<2x18x72xbf16, #tpu.memory_space<vmem>>, vector<2x16x4xbf16>,
    %c0_9 = arith.constant 0 : index
    %c0_10 = arith.constant 0 : index
    %c0_11 = arith.constant 0 : index
    %6 = vector.load %arg1[%c0_9, %c0_10, %c0_11] : memref<2x16x64xbf16, #tpu.memory_space<vmem>>, vector<2x16x64xbf16>
    %c0_12 = arith.constant 0 : index
    %c1_13 = arith.constant 1 : index
    %c4 = arith.constant 4 : index
    %7 = vector.load %arg5[%c0_12, %c1_13, %c4] : memref<2x18x72xbf16, #tpu.memory_space<vmem>>, vector<2x16x64xbf16>
    tpu.vector_store %arg5[%c0_12, %c1_13, %c4], %6 {strides = array<i32>} : memref<2x18x72xbf16, #tpu.memory_space<vmem>>, vector<2x16x64xbf16>,
    %cst_14 = arith.constant 0.000000e+00 : f32
    %8 = vector.broadcast %cst_14 : f32 to vector<32x256xf32>
    %c0_15 = arith.constant 0 : index
    %c0_16 = arith.constant 0 : index
    %c0_17 = arith.constant 0 : index
    %9 = vector.load %arg5[%c0_15, %c0_16, %c0_17] : memref<2x18x72xbf16, #tpu.memory_space<vmem>>, vector<2x16x72xbf16>
    %10 = vector.shape_cast %9 : vector<2x16x72xbf16> to vector<32x72xbf16>
    %c0_18 = arith.constant 0 : index
    %c0_19 = arith.constant 0 : index
    %c0_20 = arith.constant 0 : index
    %11 = vector.load %arg2[%c0_18, %c0_19, %c0_20] : memref<3x72x256xbf16, #tpu.memory_space<vmem>>, vector<1x72x256xbf16>
    %12 = vector.shape_cast %11 : vector<1x72x256xbf16> to vector<72x256xbf16>
    %cst_21 = arith.constant dense<0.000000e+00> : vector<32x256xf32>
    %13 = tpu.matmul %10, %12, %cst_21 {dimension_numbers = #tpu.dot_dimension_numbers<[1], [0], [0], [1], [0, 0, 1, 1], [], []>} : vector<32x72xbf16>, vector<72x256xbf16>, vector<32x256xf32> -> vector<32x256xf32>
    %14 = arith.addf %8, %13 : vector<32x256xf32>
    %c0_22 = arith.constant 0 : index
    %c1_23 = arith.constant 1 : index
    %c0_24 = arith.constant 0 : index
    %15 = vector.load %arg5[%c0_22, %c1_23, %c0_24] : memref<2x18x72xbf16, #tpu.memory_space<vmem>>, vector<2x16x72xbf16>
    %16 = vector.shape_cast %15 : vector<2x16x72xbf16> to vector<32x72xbf16>
    %c1_25 = arith.constant 1 : index
    %c0_26 = arith.constant 0 : index
    %c0_27 = arith.constant 0 : index
    %17 = vector.load %arg2[%c1_25, %c0_26, %c0_27] : memref<3x72x256xbf16, #tpu.memory_space<vmem>>, vector<1x72x256xbf16>
    %18 = vector.shape_cast %17 : vector<1x72x256xbf16> to vector<72x256xbf16>
    %cst_28 = arith.constant dense<0.000000e+00> : vector<32x256xf32>
    %19 = tpu.matmul %16, %18, %cst_28 {dimension_numbers = #tpu.dot_dimension_numbers<[1], [0], [0], [1], [0, 0, 1, 1], [], []>} : vector<32x72xbf16>, vector<72x256xbf16>, vector<32x256xf32> -> vector<32x256xf32>
    %20 = arith.addf %14, %19 : vector<32x256xf32>
    %c0_29 = arith.constant 0 : index
    %c2 = arith.constant 2 : index
    %c0_30 = arith.constant 0 : index
    %21 = vector.load %arg5[%c0_29, %c2, %c0_30] : memref<2x18x72xbf16, #tpu.memory_space<vmem>>, vector<2x16x72xbf16>
    %22 = vector.shape_cast %21 : vector<2x16x72xbf16> to vector<32x72xbf16>
    %c2_31 = arith.constant 2 : index
    %c0_32 = arith.constant 0 : index
    %c0_33 = arith.constant 0 : index
    %23 = vector.load %arg2[%c2_31, %c0_32, %c0_33] : memref<3x72x256xbf16, #tpu.memory_space<vmem>>, vector<1x72x256xbf16>
    %24 = vector.shape_cast %23 : vector<1x72x256xbf16> to vector<72x256xbf16>
    %cst_34 = arith.constant dense<0.000000e+00> : vector<32x256xf32>
    %25 = tpu.matmul %22, %24, %cst_34 {dimension_numbers = #tpu.dot_dimension_numbers<[1], [0], [0], [1], [0, 0, 1, 1], [], []>} : vector<32x72xbf16>, vector<72x256xbf16>, vector<32x256xf32> -> vector<32x256xf32>
    %26 = arith.addf %20, %25 : vector<32x256xf32>
    %c0_35 = arith.constant 0 : index
    %c0_36 = arith.constant 0 : index
    %27 = vector.load %arg3[%c0_35, %c0_36] : memref<1x256xf32, #tpu.memory_space<vmem>>, vector<1x256xf32>
    %28 = vector.broadcast %27 : vector<1x256xf32> to vector<32x256xf32>
    %29 = arith.addf %26, %28 : vector<32x256xf32>
    %cst_37 = arith.constant 0.000000e+00 : f32
    %30 = vector.broadcast %cst_37 : f32 to vector<32x256xf32>
    %31 = arith.maximumf %29, %30 : vector<32x256xf32>
    %32 = vector.shape_cast %31 : vector<32x256xf32> to vector<2x16x256xf32>
    %33 = arith.truncf %32 : vector<2x16x256xf32> to vector<2x16x256xbf16>
    %c0_38 = arith.constant 0 : index
    %c0_39 = arith.constant 0 : index
    %c0_40 = arith.constant 0 : index
    %34 = vector.load %arg4[%c0_38, %c0_39, %c0_40] : memref<2x16x256xbf16, #tpu.memory_space<vmem>>, vector<2x16x256xbf16>
    tpu.vector_store %arg4[%c0_38, %c0_39, %c0_40], %33 {strides = array<i32>} : memref<2x16x256xbf16, #tpu.memory_space<vmem>>, vector<2x16x256xbf16>,
    return
  }
  func.func @transform_0(%arg0: i32) -> (i32, i32, i32) {
    %c0_i32 = arith.constant 0 : i32
    %c0_i32_0 = arith.constant 0 : i32
    %c0_i32_1 = arith.constant 0 : i32
    return %arg0, %c0_i32, %c0_i32_0 : i32, i32, i32
  }
  func.func @transform_1(%arg0: i32) -> (i32, i32, i32) {
    %c0_i32 = arith.constant 0 : i32
    %c0_i32_0 = arith.constant 0 : i32
    %c0_i32_1 = arith.constant 0 : i32
    %c0_i32_2 = arith.constant 0 : i32
    return %c0_i32, %c0_i32_0, %c0_i32_1 : i32, i32, i32
  }
  func.func @transform_2(%arg0: i32) -> (i32, i32) {
    %c0_i32 = arith.constant 0 : i32
    %c0_i32_0 = arith.constant 0 : i32
    %c0_i32_1 = arith.constant 0 : i32
    return %c0_i32, %c0_i32_0 : i32, i32
  }
  func.func @transform_3(%arg0: i32) -> (i32, i32, i32) {
    %c0_i32 = arith.constant 0 : i32
    %c0_i32_0 = arith.constant 0 : i32
    %c0_i32_1 = arith.constant 0 : i32
    return %arg0, %c0_i32, %c0_i32_0 : i32, i32, i32
  }
}

</mosaic_0001>

<bundles_post_ra>
// kernel: _lambda_.1
= control target key start
LH: loop header
LB: loop body
LE: loop exit
PB: predicated region body
PF: predicated region fallthrough
CT: control target
= control target key end

     0   :  { %vm16_vm0 = vsmask.f32 256  ;;  %vm15_vm1 = vcmask 581632   ;;  %vm74_vm2 = vsmask.f32 4368  ;;  %vm39_vm5 = vcmask 24576   ;;  %s1112_s0 = inlined_call_operand.vmem [shape: bf16[2,16,64], index: 0, kind: input, shape index: {}]   ;;  %s1113_s1 = inlined_call_operand.vmem [shape: bf16[3,72,256], index: 1, kind: input, shape index: {}]   ;;  %s1114_s2 = inlined_call_operand.vmem [shape: f32[1,256], index: 2, kind: input, shape index: {}]   ;;  %s1115_s3 = inlined_call_operand.vmem [shape: bf16[2,16,256], index: 3, kind: output, shape index: {}]  }
   0x1   :  { %v70_v0 = vld [vmem:[%s1112_s0] sm:$0xf]  ;;  %v71_v1 = vld [vmem:[%s1112_s0 + $0x4] sm:$0xf]  ;;  %v72_v6 = vld [vmem:[%s1112_s0 + $0x8] sm:$0xf] }
   0x2   :  { %v77_v2 = vshrl.u32 %v70_v0, 16  ;;  %v80_v3 = vshll.u32 %v70_v0, 16  ;;  %v85_v4 = vshrl.u32 %v71_v1, 16  ;;  %v88_v5 = vshll.u32 %v71_v1, 16  ;;  %v73_v9 = vld [vmem:[%s1112_s0 + $0xc] sm:$0xf]  ;;  %vm858_vm3 = vmand %vm15_vm1, %vm16_vm0 }
   0x3   :  { %v94_v7 = vshrl.u32 %v72_v6, 16  ;;  %v97_v8 = vshll.u32 %v72_v6, 16  ;;  %v102_v12 = vshrl.u32 %v73_v9, 16  ;;  %v105_v13 = vshll.u32 %v73_v9, 16  ;;  %v779_v16 = vld [vmem:[%s1113_s1 + $0x4] ss:$8 sps:$4 sm:$0xff]   ;;  %vm870_vm4 = vmor %vm16_vm0, %vm74_vm2 }
   0x4   :  { %v79_v10 = vrot.slane %v77_v2, 7  ;;  %v87_v11 = vrot.slane %v85_v4, 7  ;;  %v781_v17 = vld [vmem:[%s1113_s1] ss:$8 sps:$4 sm:$0xff]   ;;  %v782_v23 = vld [vmem:[%s1113_s1 + $0x14] ss:$8 sps:$4 sm:$0xff]   ;;  %408 = vmatprep.subr.bf16.mxu0 %v779_v16  ;;  %vm895_vm9 = vmand %vm39_vm5, %vm16_vm0 }
   0x5   :  { %v96_v15 = vrot.slane %v94_v7, 7  ;;  %v104_v24 = vrot.slane %v102_v12, 7  ;;  %v784_v25 = vld [vmem:[%s1113_s1 + $0x10] ss:$8 sps:$4 sm:$0xff]   ;;  %v18_v26 = vld [vmem:[#allocation2] sm:$0x1]  ;;  %409 = vmatpush1.bf16.msra.mxu0 %v781_v17 }
   0x6   :  { %v82_v18 = vor.u32 %v80_v3, %v79_v10  ;;  %v83_v19 = vrot.slane %v79_v10, 4  ;;  %v90_v21 = vor.u32 %v88_v5, %v87_v11  ;;  %v92_v22 = vrot.slane %v87_v11, 4  ;;  %v21_v27 = vld [vmem:[#allocation2 + $0xc] sm:$0x1]  ;;  %s822_s27 = smov 4   ;;  %410 = vmatprep.subr.bf16.mxu0 %v782_v23  ;;  %v159_v55 = vld [vmem:[%s1113_s1 + $0x40] sm:$0xff] }
   0x7   :  { %v99_v28 = vor.u32 %v97_v8, %v96_v15  ;;  %v19_v29 = vsel %vm858_vm3, 0, %v18_v26  ;;  %v22_v30 = vsel %vm858_vm3, 0, %v21_v27  ;;  %vm24_vm6 = vsmask.f32 7938  ;;  %v26_v31 = vld [vmem:[#allocation2 + $0x8] sm:$0x1] }
   0x8   :  { %110 = vrot.lane.b32.xlu0 %v82_v18, %s822_s27  ;;  %114 = vrot.lane.b32.xlu1 %v92_v22, %s822_s27  ;;  %v91_v32 = vsel %vm870_vm4, %v83_v19, %v90_v21  ;;  %v100_v33 = vrot.slane %v96_v15, 4  ;;  %v107_v34 = vor.u32 %v105_v13, %v104_v24  ;;  %20 = vst [vmem:[#allocation2] sm:$0x1] %v19_v29  ;;  %23 = vst [vmem:[#allocation2 + $0xc] sm:$0x1] %v22_v30  ;;  %vm32_vm8 = vcmask 27648  }
   0x9   :  { %vm25_vm7 = vmand %vm15_vm1, %vm24_vm6  ;;  %v29_v35 = vld [vmem:[#allocation2 + $0x14] sm:$0x1]  ;;  %v785_v38 = vld [vmem:[%s1113_s1 + $0x24] ss:$8 sps:$4 sm:$0xff]   ;;  %vm51_vm10 = vcmask 585248   ;;  %v823_v40 = vmov 0   ;;  %411 = vmatpush1.bf16.msra.mxu0 %v784_v25  ;;  %v713_v60 = vcombine.high %v159_v55, %v159_v55  ;;  %v712_v62 = vcombine.low %v159_v55, %v159_v55 }
   0xa   :  { %v27_v36 = vsel %vm25_vm7, 0, %v26_v31  ;;  %v30_v37 = vsel %vm25_vm7, 0, %v29_v35  ;;  %38 = vst.msk [vmem:[#allocation2 + $0x4] sm:$0xf] %vm32_vm8, %v823_v40  ;;  %47 = vst.msk [vmem:[#allocation2 + $0x10] sm:$0xf] %vm32_vm8, %v823_v40  ;;  %440 = vmatprep.mubr.bf16.mxu0 %v823_v40  ;;  %320 = vmatprep.mubr.bf16.mxu1 %v823_v40  ;;  %v108_v44 = vsel %vm870_vm4, %v100_v33, %v107_v34 }
   0xb   :  { %28 = vst [vmem:[#allocation2 + $0x8] sm:$0x1] %v27_v36  ;;  %31 = vst [vmem:[#allocation2 + $0x14] sm:$0x1] %v30_v37  ;;  %v109_v41 = vrot.slane %v104_v24, 4  ;;  %412 = vmatprep.subr.bf16.mxu0 %v785_v38  ;;  %v682_v56 = vld [vmem:[%s1113_s1 + $0x68] sm:$0xff] }
   0xc   :  { %112 = vrot.lane.b32.xlu0 %v91_v32, %s822_s27  ;;  %116 = vrot.lane.b32.xlu1 %v99_v28, %s822_s27  ;;  %vm909_vm11 = vmand %vm32_vm8, %vm24_vm6  ;;  %v787_v43 = vld [vmem:[%s1113_s1 + $0x4c] ss:$8 sps:$4 sm:$0xff]   ;;  %57 = vst.msk [vmem:[#allocation2 + $0x4] sm:$0xf] %vm51_vm10, %v823_v40  ;;  %v789_v45 = vld [vmem:[%s1113_s1 + $0x20] ss:$8 sps:$4 sm:$0xff]  }
   0xd   :  { %66 = vst.msk [vmem:[#allocation2 + $0x10] sm:$0xf] %vm51_vm10, %v823_v40  ;;  %v790_v46 = vld [vmem:[%s1113_s1 + $0x48] ss:$8 sps:$4 sm:$0xff]   ;;  %288 = vmatprep.subr.bf16.mxu1 %v787_v43  ;;  %v791_v47 = vld [vmem:[%s1113_s1 + $0x34] ss:$8 sps:$4 sm:$0xff]   ;;  %413 = vmatpush1.bf16.msra.mxu0 %v789_v45  ;;  %vm964_vm14 = vmand %vm51_vm10, %vm24_vm6 }
   0xe   :  { %289 = vmatpush1.bf16.msra.mxu1 %v790_v46  ;;  %v793_v48 = vld [vmem:[%s1113_s1 + $0x5c] ss:$8 sps:$4 sm:$0xff]   ;;  %v795_v49 = vld [vmem:[%s1113_s1 + $0x30] ss:$8 sps:$4 sm:$0xff]   ;;  %414 = vmatprep.subr.bf16.mxu0 %v791_v47  ;;  %v798_v61 = vld [vmem:[%s1113_s1 + $0x6c] ss:$8 sps:$4 sm:$0xff]  }
   0xf   :  { %v34_v50 = vld [vmem:[#allocation2] sm:$0xf]  ;;  %v44_v51 = vld [vmem:[#allocation2 + $0xc] sm:$0xf]  ;;  %290 = vmatprep.subr.bf16.mxu1 %v793_v48  ;;  %v683_v57 = vld [vmem:[%s1113_s1 + $0x70] sm:$0xff]  ;;  %vm281_vm12 = vcmask 1043456  }
  0x10   :  { %118 = vrot.lane.b32.xlu0 %v108_v44, %s822_s27  ;;  %120 = vrot.lane.b32.xlu1 %v109_v41, %s822_s27  ;;  %v796_v52 = vld [vmem:[%s1113_s1 + $0x58] ss:$8 sps:$4 sm:$0xff]   ;;  %v35_v53 = vsel %vm909_vm11, 0, %v34_v50  ;;  %v45_v54 = vsel %vm909_vm11, 0, %v44_v51  ;;  %v693_v1 = vcombine.low %v682_v56, %v683_v57  ;;  %vm58_vm13 = vcmask 582176   ;;  %v686_v7 = vld [vmem:[%s1113_s1 + $0x88] sm:$0xff] }
  0x11   :  { %36 = vst [vmem:[#allocation2] sm:$0xf] %v35_v53  ;;  %46 = vst [vmem:[#allocation2 + $0xc] sm:$0xf] %v45_v54  ;;  %415 = vmatpush1.bf16.msra.mxu0 %v795_v49  ;;  %v804_v3 = vld [vmem:[%s1113_s1 + $0x7c] ss:$8 sps:$4 sm:$0xff]   ;;  %v698_v9 = vcombine.high %v686_v7, %v686_v7  ;;  %v697_v10 = vcombine.low %v686_v7, %v686_v7 }
  0x12   :  { %v41_v58 = vld [vmem:[#allocation2 + $0x8] sm:$0x1]  ;;  %v48_v59 = vld [vmem:[#allocation2 + $0x14] sm:$0x1]  ;;  %291 = vmatpush1.bf16.msra.mxu1 %v796_v52  ;;  %714 = vmatprep.subr.msk.bf16.mxu0 %vm281_vm12, %v713_v60  ;;  %v403_v4 = vsel %vm281_vm12, %v712_v62, 0  ;;  %vm983_vm15 = vmand %vm58_vm13, %vm16_vm0  ;;  %vm128_vm1 = vcmask 551968  }
  0x13   :  { %v42_v63 = vsel %vm895_vm9, 0, %v41_v58  ;;  %v49_v0 = vsel %vm895_vm9, 0, %v48_v59  ;;  %292 = vmatprep.subr.bf16.mxu1 %v798_v61  ;;  %v803_v5 = vld [vmem:[%s1113_s1 + $0x94] ss:$8 sps:$4 sm:$0xff]   ;;  %v807_v6 = vld [vmem:[%s1113_s1 + $0x78] ss:$8 sps:$4 sm:$0xff]   ;;  %vm129_vm3 = vmand %vm128_vm1, %vm24_vm6 }
  0x14   :  { %43 = vst [vmem:[#allocation2 + $0x8] sm:$0x1] %v42_v63  ;;  %50 = vst [vmem:[#allocation2 + $0x14] sm:$0x1] %v49_v0  ;;  %v283_v19 = vsel %vm281_vm12, %v697_v10, 0  ;;  %vm135_vm2 = vcmask 548896  }
  0x15   :  { %417 = vmatpush1.bf16.msra.mxu0 %v403_v4  ;;  %vm1000_vm4 = vmand %vm135_vm2, %vm16_vm0  ;;  %v801_v38 = vld [vmem:[%s1113_s1 + $0x90] ss:$8 sps:$4 sm:$0xff]   ;;  %vm274_vm0 = vcmask 588800   ;;  %v1016_v39 = vld [vmem:[%s1113_s1 + $0xa4] ss:$8 sps:$4 sm:$0xff]   ;;  %vm467_vm8 = vcmask 1042432  }
  0x16   :  { %293 = vmatpush1.bf16.msra.mxu1 %v693_v1  ;;  %557 = vmatprep.subr.bf16.mxu0 %v803_v5  ;;  %vm162_vm5 = vsmask.f32 3328  ;;  %v808_v53 = vld [vmem:[%s1113_s1 + $0xa0] ss:$8 sps:$4 sm:$0xff]   ;;  %vm163_vm6 = vsmask.f32 7440 }
  0x17   :  { %294 = vmatprep.subr.bf16.mxu1 %v804_v3  ;;  %v815_v56 = vld [vmem:[%s1113_s1 + $0xb4] ss:$8 sps:$4 sm:$0xff]   ;;  %vm1042_vm7 = vmor %vm162_vm5, %vm163_vm6  ;;  %v813_v8 = vld [vmem:[%s1113_s1 + $0xb0] ss:$8 sps:$4 sm:$0xff]   ;;  %vm468_vm9 = vcmask 1046532  }
  0x18   :  { %v53_v11 = vld [vmem:[#allocation2] sm:$0xf]  ;;  %v63_v12 = vld [vmem:[#allocation2 + $0xc] sm:$0xf]  ;;  %vm1078_vm10 = vmor %vm467_vm8, %vm468_vm9 }
  0x19   :  { %v54_v13 = vsel %vm964_vm14, 0, %v53_v11  ;;  %v64_v14 = vsel %vm964_vm14, 0, %v63_v12  ;;  %v819_v12 = vld [vmem:[%s1113_s1 + $0xc4] ss:$8 sps:$4 sm:$0xff]  }
  0x1a   :  { %55 = vst [vmem:[#allocation2] sm:$0xf] %v54_v13  ;;  %65 = vst [vmem:[#allocation2 + $0xc] sm:$0xf] %v64_v14  ;;  %295 = vmatpush1.bf16.msra.mxu1 %v807_v6 }
  0x1b   :  { %v60_v15 = vld [vmem:[#allocation2 + $0x8] sm:$0x1]  ;;  %v67_v16 = vld [vmem:[#allocation2 + $0x14] sm:$0x1]  ;;  %699 = vmatprep.subr.msk.bf16.mxu1 %vm281_vm12, %v698_v9 }
  0x1c   :  { %v61_v17 = vsel %vm983_vm15, 0, %v60_v15  ;;  %v68_v18 = vsel %vm983_vm15, 0, %v67_v16  ;;  %v727_v16 = vld [vmem:[%s1113_s1 + $0xd0] sm:$0xff] }
  0x1d   :  { %62 = vst [vmem:[#allocation2 + $0x8] sm:$0x1] %v61_v17  ;;  %69 = vst [vmem:[#allocation2 + $0x14] sm:$0x1] %v68_v18  ;;  %v739_v21 = vcombine.high %v727_v16, %v727_v16 }
  0x1e   :  { %297 = vmatpush1.bf16.msra.mxu1 %v283_v19  ;;  %v817_v19 = vld [vmem:[%s1113_s1 + $0xc0] ss:$8 sps:$4 sm:$0xff]  }
  0x1f   :  { %751 = vmatprep.subr.bf16.mxu1 %v803_v5 }
  0x21   :  { %v130_v20 = vld [vmem:[#allocation2] sm:$0xf]  ;;  %v140_v27 = vld [vmem:[#allocation2 + $0xc] sm:$0xf] }
  0x24   :  { %v137_v22 = vld [vmem:[#allocation2 + $0x8] sm:$0x1]  ;;  %v144_v31 = vld [vmem:[#allocation2 + $0x14] sm:$0x1] }
  0x7a   :  { %v111_v23 = vpop.permute.xlu0 %110  ;;  %v115_v24 = vpop.permute.xlu1 %114 }
  0x7b   :  { %v131_v25 = vsel %vm129_vm3, %v111_v23, %v130_v20  ;;  %v138_v26 = vsel %vm1000_vm4, %v115_v24, %v137_v22  ;;  %v738_v22 = vcombine.low %v727_v16, %v727_v16 }
  0x7c   :  { %132 = vst [vmem:[#allocation2] sm:$0xf] %v131_v25  ;;  %139 = vst [vmem:[#allocation2 + $0x8] sm:$0x1] %v138_v26 }
  0x7e   :  { %v113_v28 = vpop.permute.xlu0 %112  ;;  %v117_v29 = vpop.permute.xlu1 %116 }
  0x7f   :  { %134 = vst.msk [vmem:[#allocation2 + $0x4] sm:$0xf] %vm128_vm1, %v113_v28  ;;  %v141_v30 = vsel %vm129_vm3, %v117_v29, %v140_v27  ;;  %v552_v29 = vsel %vm281_vm12, %v738_v22, 0 }
  0x80   :  { %142 = vst [vmem:[#allocation2 + $0xc] sm:$0xf] %v141_v30 }
  0x82   :  { %v119_v32 = vpop.permute.xlu0 %118  ;;  %v121_v33 = vpop.permute.xlu1 %120 }
  0x83   :  { %143 = vst.msk [vmem:[#allocation2 + $0x10] sm:$0xf] %vm128_vm1, %v119_v32  ;;  %v145_v34 = vsel %vm1000_vm4, %v121_v33, %v144_v31  ;;  %v147_v35 = vld [vmem:[#allocation2] sm:$0xf]  ;;  %v1020_v44 = vld [vmem:[#allocation2 + $0x8] sm:$0x1] }
  0x84   :  { %146 = vst [vmem:[#allocation2 + $0x14] sm:$0x1] %v145_v34  ;;  %v166_v36 = vshrl.u32 %v147_v35, 16  ;;  %v169_v37 = vshll.u32 %v147_v35, 16  ;;  %v185_v49 = vshll.u32 %v1020_v44, 16  ;;  %v475_v25 = vrot.slane %v1020_v44, 5 }
  0x85   :  { %v461_v27 = vld [vmem:[#allocation2] sm:$0xe] }
  0x86   :  { %v1018_v41 = vld [vmem:[#allocation2 + $0x4] sm:$0xf]  ;;  %v168_v42 = vrot.slane %v166_v36, 4  ;;  %v171_v43 = vrot.slane %v169_v37, 5  ;;  %v187_v63 = vrot.slane %v185_v49, 5  ;;  %v717_v31 = vrot.slane %v461_v27, 9 }
  0x87   :  { %v179_v45 = vshrl.u32 %v1018_v41, 16  ;;  %v702_v46 = vcombine.low %v147_v35, %v1018_v41  ;;  %v149_v47 = vld [vmem:[#allocation2 + $0xc] sm:$0xf]  ;;  %v175_v48 = vshll.u32 %v1018_v41, 16  ;;  %v472_v14 = vrot.slane %v1018_v41, 5 }
  0x88   :  { %v190_v50 = vshrl.u32 %v149_v47, 16  ;;  %v193_v51 = vshll.u32 %v149_v47, 16  ;;  %v172_v52 = vor.u32 %v171_v43, %v168_v42  ;;  %v462_v35 = vld [vmem:[#allocation2 + $0xc] sm:$0xe] }
  0x89   :  { %715 = vmatmul.mubr.msk.bf16.vlgmr.msra.gmra.mrb[0].mxu0 %vm274_vm0, %v702_v46  ;;  %v177_v54 = vrot.slane %v175_v48, 5  ;;  %v181_v55 = vrot.slane %v179_v45, 4  ;;  %v474_v24 = vrot.slane %v472_v14, 4  ;;  %v473_v34 = vsel %vm1078_vm10, %v717_v31, %v472_v14 }
  0x8a   :  { %558 = vmatpush1.bf16.msra.mxu0 %v801_v38  ;;  %450 = vmatprep.mubr.bf16.mxu0 %v823_v40  ;;  %v1034_v57 = vld [vmem:[#allocation2 + $0x10] sm:$0xf]  ;;  %v192_v58 = vrot.slane %v190_v50, 4  ;;  %v195_v59 = vrot.slane %v193_v51, 5  ;;  %v173_v61 = vrot.slane %v172_v52, 4 }
  0x8b   :  { %559 = vmatprep.subr.bf16.mxu0 %v1016_v39  ;;  %v203_v60 = vshrl.u32 %v1034_v57, 16  ;;  %v182_v62 = vor.u32 %v181_v55, %v177_v54  ;;  %v1038_v0 = vld [vmem:[#allocation2 + $0x14] sm:$0x1]  ;;  %v199_v3 = vshll.u32 %v1034_v57, 16  ;;  %v703_v5 = vcombine.low %v149_v47, %v1034_v57 }
  0x8c   :  { %v196_v2 = vor.u32 %v195_v59, %v192_v58  ;;  %v209_v4 = vshll.u32 %v1038_v0, 16  ;;  %v178_v10 = vsel %vm1042_vm7, %v173_v61, %v177_v54  ;;  %v476_v32 = vsel %vm1078_vm10, %v474_v24, %v475_v25  ;;  %v618_v54 = vld [vmem:[%s1114_s2] sm:$0x3] }
  0x8d   :  { %v183_v6 = vrot.slane %v182_v62, 4  ;;  %v205_v7 = vrot.slane %v203_v60, 4  ;;  %v201_v9 = vrot.slane %v199_v3, 5  ;;  %v479_v33 = vrot.slane %v1034_v57, 5 }
  0x8e   :  { %560 = vmatpush1.bf16.msra.mxu0 %v808_v53  ;;  %v197_v13 = vrot.slane %v196_v2, 4  ;;  %v211_v18 = vrot.slane %v209_v4, 5  ;;  %v728_v36 = vcombine.low %v473_v34, %v476_v32 }
  0x8f   :  { %561 = vmatprep.subr.bf16.mxu0 %v815_v56  ;;  %v188_v11 = vsel %vm1042_vm7, %v183_v6, %v187_v63  ;;  %v206_v17 = vor.u32 %v205_v7, %v201_v9  ;;  %v481_v37 = vrot.slane %v479_v33, 4 }
  0x90   :  { %v687_v15 = vcombine.low %v178_v10, %v188_v11  ;;  %v202_v23 = vsel %vm1042_vm7, %v197_v13, %v201_v9 }
  0x91   :  { %716 = vmatmul.mubr.msk.bf16.gmra.mrb[4].mxu0 %vm274_vm0, %v703_v5  ;;  %v207_v20 = vrot.slane %v206_v17, 4 }
  0x92   :  { %562 = vmatpush1.bf16.msra.mxu0 %v813_v8  ;;  %700 = vmatmul.mubr.msk.bf16.vlgmr.msra.gmra.mrb[0].mxu1 %vm274_vm0, %v687_v15 }
  0x93   :  { %756 = vmatpush1.bf16.msra.mxu1 %v801_v38  ;;  %563 = vmatprep.subr.bf16.mxu0 %v819_v12  ;;  %v212_v26 = vsel %vm1042_vm7, %v207_v20, %v211_v18  ;;  %v482_v38 = vrot.slane %v1038_v0, 5 }
  0x94   :  { %752 = vmatprep.subr.bf16.mxu1 %v1016_v39  ;;  %330 = vmatprep.mubr.bf16.mxu1 %v823_v40  ;;  %v688_v28 = vcombine.low %v202_v23, %v212_v26  ;;  %v718_v39 = vrot.slane %v462_v35, 9 }
  0x95   :  { %589 = vmatprep.mubr.bf16.mxu0 %v823_v40  ;;  %v483_v42 = vsel %vm1078_vm10, %v481_v37, %v482_v38 }
  0x96   :  { %564 = vmatpush1.bf16.msra.mxu0 %v817_v19  ;;  %v480_v41 = vsel %vm1078_vm10, %v718_v39, %v479_v33 }
  0x97   :  { %757 = vmatpush1.bf16.msra.mxu1 %v808_v53  ;;  %740 = vmatprep.subr.msk.bf16.mxu0 %vm281_vm12, %v739_v21  ;;  %v729_v43 = vcombine.low %v480_v41, %v483_v42 }
  0x98   :  { %753 = vmatprep.subr.bf16.mxu1 %v815_v56 }
  0x9a   :  { %566 = vmatpush1.bf16.msra.mxu0 %v552_v29  ;;  %701 = vmatmul.mubr.msk.bf16.gmra.mrb[4].mxu1 %vm274_vm0, %v688_v28 }
  0x9b   :  { %758 = vmatpush1.bf16.msra.mxu1 %v813_v8  ;;  %599 = vmatprep.mubr.bf16.mxu1 %v823_v40  ;;  %v620_v40 = vlaneseq }
  0x9c   :  { %754 = vmatprep.subr.bf16.mxu1 %v819_v12 }
  0x9d   :  { %741 = vmatmul.mubr.msk.bf16.vlgmr.msra.gmra.mrb[0].mxu0 %vm274_vm0, %v728_v36  ;;  %v621_v51 = vshrl.u32 %v620_v40, 7 }
  0x9f   :  { %759 = vmatpush1.bf16.msra.mxu1 %v817_v19  ;;  %v622_v53 = vsub.s32 0, %v621_v51  ;;  %v626_v55 = vsub.s32 1, %v621_v51 }
  0xa0   :  { %755 = vmatprep.subr.msk.bf16.mxu1 %vm281_vm12, %v739_v21 }
  0xa1   :  { %v623_v61 = vrot.slane %v618_v54, %v622_v53  ;;  %v627_v1 = vrot.slane %v618_v54, %v626_v55 }
  0xa3   :  { %760 = vmatpush1.bf16.msra.mxu1 %v552_v29 }
  0xa6   :  { %742 = vmatmul.mubr.msk.bf16.vlgmr.msra.gmra.mrb[8].mxu1 %vm274_vm0, %v729_v43 }
 0x164   :  { %v452_v44 = vpop.f32.mrb[4].mxu0 }
 0x165   :  { %v322_v45 = vpop.f32.mrb[0].mxu1  ;;  %v454_v46 = vpop.f32.mrb[5].mxu0 }
 0x166   :  { %v324_v47 = vpop.f32.mrb[1].mxu1  ;;  %v456_v48 = vpop.f32.mrb[6].mxu0 }
 0x167   :  { %v326_v49 = vpop.f32.mrb[2].mxu1  ;;  %v458_v50 = vpop.f32.mrb[7].mxu0 }
 0x168   :  { %v328_v52 = vpop.f32.mrb[3].mxu1 }
 0x16d   :  { %v332_v56 = vpop.f32.mrb[4].mxu1 }
 0x16e   :  { %v453_v57 = vadd.f32 %v452_v44, %v332_v56  ;;  %v334_v58 = vpop.f32.mrb[5].mxu1 }
 0x16f   :  { %v455_v59 = vadd.f32 %v454_v46, %v334_v58  ;;  %v336_v60 = vpop.f32.mrb[6].mxu1 }
 0x170   :  { %v457_v62 = vadd.f32 %v456_v48, %v336_v60  ;;  %v591_v63 = vpop.f32.mrb[0].mxu0  ;;  %v338_v0 = vpop.f32.mrb[7].mxu1 }
 0x171   :  { %v761_v2 = vadd.f32 %v591_v63, %v322_v45  ;;  %v459_v3 = vadd.f32 %v458_v50, %v338_v0  ;;  %v593_v4 = vpop.f32.mrb[1].mxu0 }
 0x172   :  { %v762_v5 = vadd.f32 %v593_v4, %v324_v47  ;;  %v595_v6 = vpop.f32.mrb[2].mxu0 }
 0x173   :  { %v630_v7 = vadd.f32 %v761_v2, %v623_v61  ;;  %v763_v8 = vadd.f32 %v595_v6, %v326_v49  ;;  %v597_v9 = vpop.f32.mrb[3].mxu0 }
 0x174   :  { %v631_v10 = vadd.f32 %v762_v5, %v627_v1  ;;  %v764_v11 = vadd.f32 %v597_v9, %v328_v52 }
 0x175   :  { %v638_v12 = vmax.f32 %v630_v7, 0.0  ;;  %v632_v13 = vadd.f32 %v763_v8, %v623_v61 }
 0x176   :  { %v639_v14 = vmax.f32 %v631_v10, 0.0  ;;  %v633_v15 = vadd.f32 %v764_v11, %v627_v1 }
 0x177   :  { %v640_v16 = vmax.f32 %v632_v13, 0.0 }
 0x178   :  { %v747_v17 = vpack.c.bf16 %v639_v14, %v638_v12  ;;  %v641_v18 = vmax.f32 %v633_v15, 0.0 }
 0x179   :  { %v601_v19 = vpop.f32.mrb[8].mxu1 }
 0x17a   :  { %670 = vst [vmem:[%s1115_s3] sm:$0xff] %v747_v17  ;;  %v748_v20 = vpack.c.bf16 %v641_v18, %v640_v16  ;;  %v614_v21 = vadd.f32 %v601_v19, %v453_v57  ;;  %v603_v22 = vpop.f32.mrb[9].mxu1 }
 0x17b   :  { %v615_v23 = vadd.f32 %v603_v22, %v455_v59  ;;  %v605_v24 = vpop.f32.mrb[10].mxu1 }
 0x17c   :  { %671 = vst [vmem:[%s1115_s3 + $0x8] sm:$0xff] %v748_v20  ;;  %v634_v25 = vadd.f32 %v623_v61, %v614_v21  ;;  %v616_v26 = vadd.f32 %v605_v24, %v457_v62  ;;  %v607_v27 = vpop.f32.mrb[11].mxu1 }
 0x17d   :  { %v635_v28 = vadd.f32 %v627_v1, %v615_v23  ;;  %v617_v29 = vadd.f32 %v607_v27, %v459_v3 }
 0x17e   :  { %v642_v30 = vmax.f32 %v634_v25, 0.0  ;;  %v636_v31 = vadd.f32 %v623_v61, %v616_v26 }
 0x17f   :  { %v643_v32 = vmax.f32 %v635_v28, 0.0  ;;  %v637_v33 = vadd.f32 %v627_v1, %v617_v29 }
 0x180   :  { %v644_v34 = vmax.f32 %v636_v31, 0.0 }
 0x181   :  { %v749_v35 = vpack.c.bf16 %v643_v32, %v642_v30  ;;  %v645_v36 = vmax.f32 %v637_v33, 0.0 }
 0x183   :  { %672 = vst [vmem:[%s1115_s3 + $0x10] sm:$0xff] %v749_v35  ;;  %v750_v37 = vpack.c.bf16 %v645_v36, %v644_v34 }
 0x185   :  { %673 = vst [vmem:[%s1115_s3 + $0x18] sm:$0xff] %v750_v37 }

</bundles_post_ra>
